<compile_context>
chip_gen: v5e
topology: v5e:2x2
jax: 0.10.0
libtpu: 0.0.40
codegen_flags: <defaults>
</compile_context>

<pallas_src>
import functools
import math

import jax
import jax.numpy as jnp
from jax.experimental import pallas as pl
from jax.experimental.pallas import tpu as pltpu


VMEM_LIMIT = 32 * 1024 * 1024  # safe on v5e/v6e/v7x; tiles below are far smaller


# ----------------------------- dense (tiled matmul + bias + act) -----------------------------

def _dense_kernel(x_ref, w_ref, b_ref, o_ref, acc_ref, *, act):
    @pl.when(pl.program_id(2) == 0)
    def _():
        acc_ref[...] = jnp.zeros_like(acc_ref)

    # bf16 x bf16 -> f32 accumulation on the MXU (no explicit upcast of inputs).
    acc_ref[...] += jnp.dot(x_ref[...], w_ref[...],
                            preferred_element_type=jnp.float32)

    @pl.when(pl.program_id(2) == pl.num_programs(2) - 1)
    def _():
        y = acc_ref[...] + b_ref[...]
        if act == "gelu":
            # TODO(synk): HF BERT uses exact erf-GELU; tanh-approx GELU used here (EUP-friendly).
            y = jax.nn.gelu(y, approximate=True)
        elif act == "tanh":
            y = jnp.tanh(y)
        o_ref[...] = y.astype(o_ref.dtype)


def dense(x, w, b, act="none", *, tm=128, tn=128, tk=128):
    m, kd = x.shape
    kd2, n = w.shape
    assert kd == kd2
    tm, tn, tk = min(tm, m), min(tn, n), min(tk, kd)
    assert m % tm == 0 and n % tn == 0 and kd % tk == 0
    return pl.pallas_call(
        functools.partial(_dense_kernel, act=act),
        out_shape=jax.ShapeDtypeStruct((m, n), x.dtype),
        grid=(m // tm, n // tn, kd // tk),
        in_specs=[
            pl.BlockSpec((tm, tk), lambda i, j, k: (i, k)),
            pl.BlockSpec((tk, tn), lambda i, j, k: (k, j)),
            pl.BlockSpec((1, tn), lambda i, j, k: (0, j)),
        ],
        out_specs=pl.BlockSpec((tm, tn), lambda i, j, k: (i, j)),
        scratch_shapes=[pltpu.VMEM((tm, tn), jnp.float32)],
        compiler_params=pltpu.CompilerParams(
            dimension_semantics=("parallel", "parallel", "arbitrary"),
            vmem_limit_bytes=VMEM_LIMIT),
    )(x, w, b.reshape(1, n).astype(jnp.float32))


# ----------------------------- dense + residual + LayerNorm (fused epilogue) -----------------

def _dense_res_ln_kernel(x_ref, w_ref, b_ref, res_ref, g_ref, bt_ref, o_ref,
                         acc_ref, *, eps):
    @pl.when(pl.program_id(1) == 0)
    def _():
        acc_ref[...] = jnp.zeros_like(acc_ref)

    acc_ref[...] += jnp.dot(x_ref[...], w_ref[...],
                            preferred_element_type=jnp.float32)

    @pl.when(pl.program_id(1) == pl.num_programs(1) - 1)
    def _():
        y = acc_ref[...] + b_ref[...] + res_ref[...].astype(jnp.float32)
        mu = jnp.mean(y, axis=-1, keepdims=True)
        var = jnp.mean(jnp.square(y - mu), axis=-1, keepdims=True)
        y = (y - mu) * jax.lax.rsqrt(var + eps)
        o_ref[...] = (y * g_ref[...] + bt_ref[...]).astype(o_ref.dtype)


def dense_residual_layernorm(x, w, b, residual, gamma, beta,
                             *, eps=1e-12, tm=128, tk=128):
    m, kd = x.shape
    kd2, n = w.shape
    assert kd == kd2 and residual.shape == (m, n)
    tm, tk = min(tm, m), min(tk, kd)
    assert m % tm == 0 and kd % tk == 0
    return pl.pallas_call(
        functools.partial(_dense_res_ln_kernel, eps=eps),
        out_shape=jax.ShapeDtypeStruct((m, n), x.dtype),
        grid=(m // tm, kd // tk),
        in_specs=[
            pl.BlockSpec((tm, tk), lambda i, k: (i, k)),
            pl.BlockSpec((tk, n), lambda i, k: (k, 0)),
            pl.BlockSpec((1, n), lambda i, k: (0, 0)),
            pl.BlockSpec((tm, n), lambda i, k: (i, 0)),
            pl.BlockSpec((1, n), lambda i, k: (0, 0)),
            pl.BlockSpec((1, n), lambda i, k: (0, 0)),
        ],
        out_specs=pl.BlockSpec((tm, n), lambda i, k: (i, 0)),
        scratch_shapes=[pltpu.VMEM((tm, n), jnp.float32)],
        compiler_params=pltpu.CompilerParams(
            dimension_semantics=("parallel", "arbitrary"),
            vmem_limit_bytes=VMEM_LIMIT),
    )(x, w, b.reshape(1, n).astype(jnp.float32), residual,
      gamma.reshape(1, n).astype(jnp.float32),
      beta.reshape(1, n).astype(jnp.float32))


# ----------------------------- plain LayerNorm (embeddings, no residual) ---------------------

def _layernorm_kernel(x_ref, g_ref, b_ref, o_ref, *, eps):
    x = x_ref[...].astype(jnp.float32)
    mu = jnp.mean(x, axis=-1, keepdims=True)
    var = jnp.mean(jnp.square(x - mu), axis=-1, keepdims=True)
    y = (x - mu) * jax.lax.rsqrt(var + eps)
    o_ref[...] = (y * g_ref[...] + b_ref[...]).astype(o_ref.dtype)


def layernorm(x, gamma, beta, *, eps=1e-12, tm=128, out_dtype=None):
    m, h = x.shape
    tm = min(tm, m)
    assert m % tm == 0
    out_dtype = out_dtype or x.dtype
    return pl.pallas_call(
        functools.partial(_layernorm_kernel, eps=eps),
        out_shape=jax.ShapeDtypeStruct((m, h), out_dtype),
        grid=(m // tm,),
        in_specs=[
            pl.BlockSpec((tm, h), lambda i: (i, 0)),
            pl.BlockSpec((1, h), lambda i: (0, 0)),
            pl.BlockSpec((1, h), lambda i: (0, 0)),
        ],
        out_specs=pl.BlockSpec((tm, h), lambda i: (i, 0)),
        compiler_params=pltpu.CompilerParams(
            dimension_semantics=("parallel",),
            vmem_limit_bytes=VMEM_LIMIT),
    )(x, gamma.reshape(1, h).astype(jnp.float32),
      beta.reshape(1, h).astype(jnp.float32))


# ----------------------------- attention (fused QKV, per-batch grid) -------------------------

def _attention_kernel(qkv_ref, mask_ref, o_ref, *, n_heads, scale):
    qkv = qkv_ref[0]                      # (S, 3H) bf16, all heads for this batch elem
    s_len, h3 = qkv.shape
    h = h3 // 3
    dh = h // n_heads
    mask = mask_ref[0]                    # (1, S) additive key mask, broadcasts over queries
    outs = []
    # TODO(synk): at long sequence lengths, stream KV tiles with an online-softmax
    # accumulator (flash pattern); at S=128 a single KV tile fits VMEM comfortably.
    for hd in range(n_heads):             # static unroll; heads are static lane slices
        q = qkv[:, hd * dh:(hd + 1) * dh]
        k = qkv[:, h + hd * dh:h + (hd + 1) * dh]
        v = qkv[:, 2 * h + hd * dh:2 * h + (hd + 1) * dh]
        s = jnp.einsum("qd,kd->qk", q, k,
                       preferred_element_type=jnp.float32) * scale + mask
        mx = jnp.max(s, axis=-1, keepdims=True)
        p = jnp.exp(s - mx)
        p = p * pl.reciprocal(jnp.sum(p, axis=-1, keepdims=True), approx=True)
        outs.append(jnp.dot(p.astype(v.dtype), v,
                            preferred_element_type=jnp.float32))
    o_ref[...] = jnp.concatenate(outs, axis=-1).astype(o_ref.dtype)[None]


def attention(qkv, mask, *, n_heads, scale):
    b, s, h3 = qkv.shape
    h = h3 // 3
    return pl.pallas_call(
        functools.partial(_attention_kernel, n_heads=n_heads, scale=scale),
        out_shape=jax.ShapeDtypeStruct((b, s, h), qkv.dtype),
        grid=(b,),
        in_specs=[
            pl.BlockSpec((1, s, h3), lambda i: (i, 0, 0)),
            pl.BlockSpec((1, 1, s), lambda i: (i, 0, 0)),
        ],
        out_specs=pl.BlockSpec((1, s, h), lambda i: (i, 0, 0)),
        compiler_params=pltpu.CompilerParams(
            dimension_semantics=("parallel",),
            vmem_limit_bytes=VMEM_LIMIT),
    )(qkv, mask)


# ----------------------------- parameters -----------------------------

def init_params(key, cfg):
    H, I, L = cfg["hidden"], cfg["intermediate"], cfg["layers"]
    C = cfg["num_classes"]
    c_pad = ((C + 127) // 128) * 128          # lane-dense classifier output
    std = 0.02
    keys = iter(jax.random.split(key, 5 + 4 * L))

    def nrm(shape, dtype=jnp.bfloat16):
        return (std * jax.random.normal(next(keys), shape, jnp.float32)).astype(dtype)

    params = {
        "word_emb": nrm((cfg["vocab"], H), jnp.float32),
        "pos_emb": nrm((cfg["max_pos"], H), jnp.float32),
        "type_emb": nrm((2, H), jnp.float32),
        "emb_ln_g": jnp.ones((H,), jnp.float32),
        "emb_ln_b": jnp.zeros((H,), jnp.float32),
        "pooler_w": nrm((H, H)),
        "pooler_b": jnp.zeros((H,), jnp.float32),
        "fc_w": jnp.zeros((H, c_pad), jnp.float32).at[:, :C].set(
            std * jax.random.normal(next(keys), (H, C), jnp.float32)
        ).astype(jnp.bfloat16),
        "fc_b": jnp.zeros((c_pad,), jnp.float32),
        "layers": [],
    }
    for _ in range(L):
        params["layers"].append({
            # fused Q/K/V projection
            "wqkv": nrm((H, 3 * H)), "bqkv": jnp.zeros((3 * H,), jnp.float32),
            "wo": nrm((H, H)), "bo": jnp.zeros((H,), jnp.float32),
            "ln1_g": jnp.ones((H,), jnp.float32), "ln1_b": jnp.zeros((H,), jnp.float32),
            "w1": nrm((H, I)), "b1": jnp.zeros((I,), jnp.float32),
            "w2": nrm((I, H)), "b2": jnp.zeros((H,), jnp.float32),
            "ln2_g": jnp.ones((H,), jnp.float32), "ln2_b": jnp.zeros((H,), jnp.float32),
        })
    return params


# ----------------------------- forward pass -----------------------------

def bert_language_model_forward(params, input_ids, attention_mask, cfg):
    B, S = input_ids.shape
    H, nH = cfg["hidden"], cfg["heads"]
    dH = H // nH

    # Embedding gather is XLA glue; everything dense runs in Pallas kernels.
    we = params["word_emb"][input_ids]                      # (B, S, H) f32
    pe = params["pos_emb"][:S]                              # (S, H)
    te = params["type_emb"][0]                              # (H,)  token_type_ids == 0
    emb = (we + pe[None, :, :] + te[None, None, :]).reshape(B * S, H)
    x = layernorm(emb, params["emb_ln_g"], params["emb_ln_b"],
                  out_dtype=jnp.bfloat16)                   # (B*S, H) bf16

    # Additive key mask, one copy per batch element (broadcast to heads inside the kernel).
    mask = ((1.0 - attention_mask.astype(jnp.float32)) * -1e9).reshape(B, 1, S)

    scale = 1.0 / math.sqrt(dH)
    for lyr in params["layers"]:
        qkv = dense(x, lyr["wqkv"], lyr["bqkv"])                        # (B*S, 3H)
        ctx = attention(qkv.reshape(B, S, 3 * H), mask,
                        n_heads=nH, scale=scale).reshape(B * S, H)      # (B*S, H)
        x = dense_residual_layernorm(ctx, lyr["wo"], lyr["bo"], x,
                                     lyr["ln1_g"], lyr["ln1_b"])        # attn-out + LN1
        h = dense(x, lyr["w1"], lyr["b1"], act="gelu")                  # FFN up + GELU
        x = dense_residual_layernorm(h, lyr["w2"], lyr["b2"], x,
                                     lyr["ln2_g"], lyr["ln2_b"])        # FFN down + LN2

    cls = x.reshape(B, S, H)[:, 0, :]                                   # (B, H)
    pooled = dense(cls, params["pooler_w"], params["pooler_b"], act="tanh")
    logits_pad = dense(pooled, params["fc_w"], params["fc_b"])          # lane-padded head
    return logits_pad[:, :cfg["num_classes"]].astype(jnp.float32)


# ----------------------------- main -----------------------------

if __name__ == "__main__":
    cfg = dict(vocab=512, hidden=128, heads=2, intermediate=256, layers=2,
               max_pos=128, num_classes=8)
    key = jax.random.PRNGKey(0)
    k_param, k_ids = jax.random.split(key)
    params = init_params(k_param, cfg)

    B, S = 2, 128
    input_ids = jax.random.randint(k_ids, (B, S), 0, cfg["vocab"], dtype=jnp.int32)
    attention_mask = jnp.concatenate(
        [jnp.ones((1, S), jnp.int32),
         jnp.concatenate([jnp.ones((1, S // 2), jnp.int32),
                          jnp.zeros((1, S // 2), jnp.int32)], axis=1)], axis=0)

    logits = bert_language_model_forward(params, input_ids, attention_mask, cfg)
    jax.block_until_ready(logits)
    assert logits.shape == (B, cfg["num_classes"]), logits.shape
    assert bool(jnp.all(jnp.isfinite(logits)))
    print("KERNEL_OK")
</pallas_src>

<mosaic_0001>
module attributes {stable_mosaic.version = 11 : i64} {
  func.func @_layernorm_kernel(%arg0: i32, %arg1: memref<128x128xf32, #tpu.memory_space<vmem>>, %arg2: memref<1x128xf32, #tpu.memory_space<vmem>>, %arg3: memref<1x128xf32, #tpu.memory_space<vmem>>, %arg4: memref<128x128xbf16, #tpu.memory_space<vmem>>) attributes {dimension_semantics = [#tpu.dimension_semantics<parallel>], iteration_bounds = array<i64: 2>, scalar_prefetch = 0 : i64, scratch_operands = 0 : i64, tpu.core_type = #tpu.core_type<tc>, window_params = [{transform_indices = @transform_0, window_bounds = array<i64: 128, 128>}, {pipeline_mode = #tpu.pipeline_mode<synchronous>, transform_indices = @transform_1, window_bounds = array<i64: 1, 128>}, {pipeline_mode = #tpu.pipeline_mode<synchronous>, transform_indices = @transform_2, window_bounds = array<i64: 1, 128>}, {transform_indices = @transform_3, window_bounds = array<i64: 128, 128>}]} {
    %c0 = arith.constant 0 : index
    %c0_0 = arith.constant 0 : index
    %0 = vector.load %arg1[%c0, %c0_0] : memref<128x128xf32, #tpu.memory_space<vmem>>, vector<128x128xf32>
    %cst = arith.constant dense<0.000000e+00> : vector<128xf32>
    %1 = vector.multi_reduction <add>, %0, %cst [1] : vector<128x128xf32> to vector<128xf32>
    %2 = vector.shape_cast %1 : vector<128xf32> to vector<128x1xf32>
    %cst_1 = arith.constant 1.280000e+02 : f32
    %3 = vector.broadcast %cst_1 : f32 to vector<128x1xf32>
    %4 = arith.divf %2, %3 : vector<128x1xf32>
    %5 = vector.broadcast %4 : vector<128x1xf32> to vector<128x128xf32>
    %6 = arith.subf %0, %5 : vector<128x128xf32>
    %7 = arith.mulf %6, %6 : vector<128x128xf32>
    %cst_2 = arith.constant dense<0.000000e+00> : vector<128xf32>
    %8 = vector.multi_reduction <add>, %7, %cst_2 [1] : vector<128x128xf32> to vector<128xf32>
    %9 = vector.shape_cast %8 : vector<128xf32> to vector<128x1xf32>
    %cst_3 = arith.constant 1.280000e+02 : f32
    %10 = vector.broadcast %cst_3 : f32 to vector<128x1xf32>
    %11 = arith.divf %9, %10 : vector<128x1xf32>
    %12 = vector.broadcast %4 : vector<128x1xf32> to vector<128x128xf32>
    %13 = arith.subf %0, %12 : vector<128x128xf32>
    %cst_4 = arith.constant 9.99999996E-13 : f32
    %14 = vector.broadcast %cst_4 : f32 to vector<128x1xf32>
    %15 = arith.addf %11, %14 : vector<128x1xf32>
    %16 = math.rsqrt %15 : vector<128x1xf32>
    %17 = vector.broadcast %16 : vector<128x1xf32> to vector<128x128xf32>
    %18 = arith.mulf %13, %17 : vector<128x128xf32>
    %c0_5 = arith.constant 0 : index
    %c0_6 = arith.constant 0 : index
    %19 = vector.load %arg2[%c0_5, %c0_6] : memref<1x128xf32, #tpu.memory_space<vmem>>, vector<1x128xf32>
    %20 = vector.broadcast %19 : vector<1x128xf32> to vector<128x128xf32>
    %21 = arith.mulf %18, %20 : vector<128x128xf32>
    %c0_7 = arith.constant 0 : index
    %c0_8 = arith.constant 0 : index
    %22 = vector.load %arg3[%c0_7, %c0_8] : memref<1x128xf32, #tpu.memory_space<vmem>>, vector<1x128xf32>
    %23 = vector.broadcast %22 : vector<1x128xf32> to vector<128x128xf32>
    %24 = arith.addf %21, %23 : vector<128x128xf32>
    %25 = arith.truncf %24 : vector<128x128xf32> to vector<128x128xbf16>
    %c0_9 = arith.constant 0 : index
    %c0_10 = arith.constant 0 : index
    %26 = vector.load %arg4[%c0_9, %c0_10] : memref<128x128xbf16, #tpu.memory_space<vmem>>, vector<128x128xbf16>
    tpu.vector_store %arg4[%c0_9, %c0_10], %25 {strides = array<i32>} : memref<128x128xbf16, #tpu.memory_space<vmem>>, vector<128x128xbf16>,
    return
  }
  func.func @transform_0(%arg0: i32) -> (i32, i32) {
    %c0_i32 = arith.constant 0 : i32
    %c0_i32_0 = arith.constant 0 : i32
    return %arg0, %c0_i32 : i32, i32
  }
  func.func @transform_1(%arg0: i32) -> (i32, i32) {
    %c0_i32 = arith.constant 0 : i32
    %c0_i32_0 = arith.constant 0 : i32
    %c0_i32_1 = arith.constant 0 : i32
    return %c0_i32, %c0_i32_0 : i32, i32
  }
  func.func @transform_2(%arg0: i32) -> (i32, i32) {
    %c0_i32 = arith.constant 0 : i32
    %c0_i32_0 = arith.constant 0 : i32
    %c0_i32_1 = arith.constant 0 : i32
    return %c0_i32, %c0_i32_0 : i32, i32
  }
  func.func @transform_3(%arg0: i32) -> (i32, i32) {
    %c0_i32 = arith.constant 0 : i32
    %c0_i32_0 = arith.constant 0 : i32
    return %arg0, %c0_i32 : i32, i32
  }
}

</mosaic_0001>

<bundles_post_ra>
// kernel: tpu_custom_call.1
= control target key start
LH: loop header
LB: loop body
LE: loop exit
PB: predicated region body
PF: predicated region fallthrough
CT: control target
= control target key end

     0   :  { %8 = vsyncpa [#allocation3], 0  ;;  %s1581_s0 = inlined_call_operand.hbm [shape: f32[256,128], index: 0, kind: input, shape index: {}]   ;;  %s1582_s1 = inlined_call_operand.hbm [shape: f32[1,128], index: 1, kind: input, shape index: {}]   ;;  %s1583_s2 = inlined_call_operand.vmem [shape: f32[1,128], index: 2, kind: input, shape index: {}]   ;;  %s1584_s3 = inlined_call_operand.hbm [shape: bf16[256,128], index: 3, kind: output, shape index: {}]  }
   0x1   :  { %10 = vsyncpa [#allocation3 + $0x1], 0 }
   0x2   :  { %11 = vsyncpa [#allocation6], 0 }
   0x3   :  { %12 = vsyncpa [#allocation4], 0 }
   0x4   :  { %14 = vsyncpa [#allocation4 + $0x1], 0  ;;  %s1043_s12 = smov 0   ;;  %s1045_s13 = smov 0  }
   0x5   :  { %s1047_s14 = smov 0   ;;  %s1049_s15 = smov 0  }
   0x6 LB: > { %s1064_s16 = sadd.s32 4294967295, %s1015_s15   ;;  %s722_s17 = sadd.s32 4294967294, %s1015_s15   ;;  %s1015_s15 = sphi %s1049_s15, %s1603_s15   ;;  %s1011_s14 = sphi %s1047_s14, %s1602_s14   ;;  %s1007_s13 = sphi %s1045_s13, %s1601_s13   ;;  %s1003_s12 = sphi %s1043_s12, %s1600_s12  }
   0x7   : > { %s1068_s18 = sadd.s32 1, %s1015_s15   ;;  %s27_s19 = sadd.s32 1, %s1011_s14 }
   0x8   : > { %s24_s20 = ssub.s32 %s1015_s15, %s1068_s18  ;;  %p34_p0 = scmp.ne.s32.totalorder %s1011_s14, %s1007_s13 }
   0x9   : > { %p25_p1 = scmp.eq.s32.totalorder %s24_s20, 0  ;;  %p35_p2 = scmp.eq.s32.totalorder %s1015_s15, 0 }
   0xa   : > { %p40_p3 = scmp.ne.s32.totalorder %s1007_s13, %s1003_s12  ;;  %p41_p4 = scmp.eq.s32.totalorder %s1064_s16, 0 }
   0xb   : > { %s1080_s21 = scalar_select %p25_p1, %s1011_s14, %s27_s19  }
   0xc   : > { %p1082_p5 = por %p35_p2, %p34_p0  ;;  %p1088_p6 = por %p41_p4, %p40_p3 }
   0xd   : > { %p106_p7 = scmp.eq.s32.totalorder %s1064_s16, 1  ;;  %p112_p8 = scmp.eq.s32.totalorder %s722_s17, 1 }
   0xe   : > { %p723_p9 = scmp.ge.s32.totalorder %s1015_s15, 1  ;;  %p119_p10 = scmp.lt.s32.totalorder %s1015_s15, 3 }
   0xf   : > { %p1095_p11 = por %p106_p7, %p34_p0  ;;  %p1099_p12 = por %p112_p8, %p40_p3 }
  0x10   : > { %p1103_p13 = pnand %p723_p9, %p119_p10  ;;  %s131_s29 = sshll.u32 %s1582_s1, 4  ;;  %s132_s29 = int_to_ptr.hbm [resolvable:$true] %s131_s29 }
  0x11   : > { %s1017_s30 = smov [#allocation5]   ;;  %p808_p3 = scmp.lt.s32.totalorder %s1015_s15, 2 }
  0x12   : > { %p795_p1 = pneg %p1103_p13  ;;  %s133_s4 = sshll.u32 %s1017_s30, 4  ;;  %s134_s4 = int_to_ptr.vmem [resolvable:$true] %s133_s4 }
  0x13   : > { %s147_s5 = sand.u32 1, %s1011_s14   ;;  %p1119_p7 = pnand %p808_p3, %p1082_p5 }
  0x14   : > { %p796_p2 = pnand %p795_p1, %p41_p4  ;;  %s726_s7 = sshll.u32 %s147_s5, 7 }
  0x15   : > { %s738_s8 = sshll.u32 %s1015_s15, 7  ;;  %s151_s19 = scalar_lea.vmem [#allocation2], %s726_s7 }
  0x16   : > { %798 = dma.hbm_to_vmem [thread:$0]  (!%p796_p2), %s132_s29, 16, %s134_s4, [#allocation6]  }
  0x17   : > { %s156_s11 = scalar_lea.hbm %s1581_s0, %s738_s8  ;;  %s159_s20 = sshll.u32 %s151_s19, 4  ;;  %s160_s20 = int_to_ptr.vmem [resolvable:$true] %s159_s20 }
  0x18   : > { %s157_s17 = sshll.u32 %s156_s11, 4  ;;  %s148_s27 = scalar_lea.sflag [#allocation3], %s147_s5  ;;  %s158_s17 = int_to_ptr.hbm [resolvable:$true] %s157_s17 }
  0x19   : > { %s915_s28 = sshra.s32 %s158_s17, 4  ;;  %p919_p8 = pneg %p1119_p7  ;;  %s916_s28 = int_to_ptr.hbm [resolvable:$true] %s915_s28 }
  0x1a   : > { %s917_s22 = scalar_lea.hbm %s916_s28, 128  ;;  %s922_s4 = scalar_lea.hbm %s1581_s0, 256 }
  0x1b   : > { %p918_p5 = scmp.ne.s32.totalorder %s916_s28, %s917_s22  ;;  %p923_p1 = scmp.lt.s32.totalorder %s916_s28, %s1581_s0 }
  0x1c   : > { %p924_p2 = scmp.lt.s32.totalorder %s922_s4, %s917_s22 }
  0x1d   : > { %p920_p9 = pnand %p919_p8, %p918_p5 }
  0x1e   : > { %p925_p3 = por %p924_p2, %p923_p1 }
  0x1f   : > { %p921_p10 = pneg %p920_p9 }
  0x21   : > { %p926_p0 = pnand %p925_p3, %p921_p10 }
  0x23   : > { %929 = shalt.err (!%p926_p0)
}
  0x24   : > { %s1018_s5 = smov 128   ;;  %s1019_s7 = smov 8  }
  0x25   : > { %802 = dma.hbm_to_vmem [thread:$0]  (!%p1119_p7), %s158_s17, 2048, %s160_s20, %s148_s27, %s1018_s5, %s1018_s5, %s1019_s7  }
  0x26   : > { %171 = sbr.rel (%p1103_p13) target bundleno = 368 (0x170), region = 32  ;;  %s1140_s10 = sand.u32 (!%p1103_p13), 1, %s1007_s13  }
  0x27   : > { %s730_s11 = sshll.u32 (!%p1103_p13), %s1140_s10, 7  ;;  %s174_s19 = scalar_lea.sflag (!%p1103_p13), [#allocation3], %s1140_s10 }
  0x28   : > { %s1144_s28 = scalar_lea.vmem (!%p1103_p13), [#allocation2], %s730_s11 }
  0x2b   : > { %990 = dma.done.wait (%p1088_p6), %s174_s19, 2048  }
  0x2c   : > { %992 = vsyncadd (%p1088_p6), %s174_s19, 4294965248 }
  0x2d   : > { %994 = dma.done.wait (%p41_p4), [#allocation6], 16  }
  0x2e   : > { %996 = vsyncadd (%p41_p4), [#allocation6], 4294967280  ;;  %v1155_v0 = vld [vmem:[%s1144_s28 + $0x20] sm:$0xff]  ;;  %v210_v1 = vld [vmem:[%s1144_s28 + $0x10] sm:$0xff]  ;;  %v1020_v16 = vmov 128.0   ;;  %s732_s6 = sshll.u32 %s1140_s10, 6 }
  0x2f   : > { %v208_v2 = vld [vmem:[%s1144_s28] sm:$0xff]  ;;  %232 = vadd.xlane.f32.xlu2 %v1155_v0  ;;  %228 = vadd.xlane.f32.xlu1 %v210_v1  ;;  %v213_v3 = vld [vmem:[%s1144_s28 + $0x28] sm:$0xff]  ;;  %v211_v4 = vld [vmem:[%s1144_s28 + $0x18] sm:$0xff]  ;;  %851 = vrcp.f32 %v1020_v16  ;;  %s1419_s17 = scalar_lea.vmem [#allocation7], %s732_s6  ;;  %s739_s20 = sshll.u32 %s1064_s16, 6 }
  0x30   : > { %224 = vadd.xlane.f32.xlu0 %v208_v2  ;;  %v209_v5 = vld [vmem:[%s1144_s28 + $0x8] sm:$0xff]  ;;  %v216_v6 = vld [vmem:[%s1144_s28 + $0x40] sm:$0xff]  ;;  %v1165_v7 = vld [vmem:[%s1144_s28 + $0x38] sm:$0xff]  ;;  %s635_s29 = scalar_lea.hbm %s1584_s3, %s739_s20  ;;  %s636_s16 = sshll.u32 %s1419_s17, 4  ;;  %s637_s16 = int_to_ptr.vmem [resolvable:$true] %s636_s16 }
  0x31   : > { %v214_v8 = vld [vmem:[%s1144_s28 + $0x30] sm:$0xff]  ;;  %v1170_v9 = vld [vmem:[%s1144_s28 + $0x58] sm:$0xff]  ;;  %v1176_v11 = vld [vmem:[%s1144_s28 + $0x48] sm:$0xff]  ;;  %s638_s30 = sshll.u32 %s635_s29, 4  ;;  %s624_s4 = scalar_lea.sflag [#allocation4], %s1140_s10  ;;  %s639_s30 = int_to_ptr.hbm [resolvable:$true] %s638_s30 }
  0x32   : > { %v1173_v10 = vld [vmem:[%s1144_s28 + $0x50] sm:$0xff]  ;;  %v1185_v13 = vld [vmem:[%s1144_s28 + $0x68] sm:$0xff]  ;;  %v1188_v14 = vld [vmem:[%s1144_s28 + $0x60] sm:$0xff]  ;;  %s959_s9 = sshra.s32 %s639_s30, 4  ;;  %s965_s11 = scalar_lea.hbm %s1584_s3, 128  ;;  %s960_s9 = int_to_ptr.hbm [resolvable:$true] %s959_s9 }
  0x33   : > { %v1182_v12 = vld [vmem:[%s1144_s28 + $0x70] sm:$0xff]  ;;  %v1194_v15 = vld [vmem:[%s1144_s28 + $0x78] sm:$0xff]  ;;  %s961_s8 = scalar_lea.hbm %s960_s9, 64  ;;  %p966_p0 = scmp.lt.s32.totalorder %s960_s9, %s1584_s3 }
  0x34   : > { %p962_p4 = scmp.ne.s32.totalorder %s960_s9, %s961_s8  ;;  %p967_p7 = scmp.lt.s32.totalorder %s965_s11, %s961_s8 }
  0x35   : > { %v852_v17 = vpop.eup %851 }
  0x36   : > { %v257_v18 = vmul.f32 128.0, %v852_v17  ;;  %vm261_vm0 = vweird.f32 %v852_v17  ;;  %p963_p6 = pnand %p962_p4, %p1095_p11  ;;  %p968_p5 = por %p967_p7, %p966_p0 }
  0x37   : > { %234 = vadd.xlane.f32.xlu2 %v213_v3  ;;  %230 = vadd.xlane.f32.xlu1 %v211_v4 }
  0x38   : > { %226 = vadd.xlane.f32.xlu0 %v209_v5  ;;  %v258_v19 = vsub.f32 1.0, %v257_v18  ;;  %p964_p13 = pneg %p963_p6 }
  0x3a   : > { %v259_v20 = vmul.f32 %v852_v17, %v258_v19  ;;  %p969_p8 = pnand %p968_p5, %p964_p13 }
  0x3c   : > { %v260_v21 = vadd.f32 %v852_v17, %v259_v20 }
  0x3e   : > { %v1197_v22 = vsel %vm261_vm0, %v852_v17, %v260_v21 }
  0x3f   : > { %240 = vadd.xlane.f32.xlu2 %v216_v6  ;;  %238 = vadd.xlane.f32.xlu1 %v1165_v7 }
  0x40   : > { %236 = vadd.xlane.f32.xlu0 %v214_v8 }
  0x47   : > { %246 = vadd.xlane.f32.xlu2 %v1170_v9  ;;  %244 = vadd.xlane.f32.xlu1 %v1173_v10 }
  0x48   : > { %242 = vadd.xlane.f32.xlu0 %v1176_v11 }
  0x4f   : > { %252 = vadd.xlane.f32.xlu2 %v1182_v12  ;;  %250 = vadd.xlane.f32.xlu1 %v1185_v13 }
  0x50   : > { %248 = vadd.xlane.f32.xlu0 %v1188_v14 }
  0x58   : > { %254 = vadd.xlane.f32.xlu0 %v1194_v15 }
  0xa2   : > { %v233_v23 = vpop.xlane.xlu2 %232  ;;  %v229_v24 = vpop.xlane.xlu1 %228 }
  0xa3   : > { %v265_v25 = vmul.f32 %v1197_v22, %v229_v24  ;;  %v225_v26 = vpop.xlane.xlu0 %224  ;;  %v267_v43 = vmul.f32 %v1197_v22, %v233_v23 }
  0xa4   : > { %v263_v27 = vmul.f32 %v1197_v22, %v225_v26 }
  0xa5   : > { %v1201_v28 = vsub.f32 %v210_v1, %v265_v25  ;;  %v1227_v49 = vsub.f32 %v1155_v0, %v267_v43 }
  0xa6   : > { %v1203_v29 = vsub.f32 %v208_v2, %v263_v27 }
  0xa7   : > { %v297_v30 = vmul.f32 %v1201_v28, %v1201_v28  ;;  %v299_v55 = vmul.f32 %v1227_v49, %v1227_v49 }
  0xa8   : > { %v295_v31 = vmul.f32 %v1203_v29, %v1203_v29 }
  0xa9   : > { %315 = vadd.xlane.f32.xlu0 %v297_v30 }
  0xaa   : > { %311 = vadd.xlane.f32.xlu1 %v295_v31  ;;  %v235_v32 = vpop.xlane.xlu2 %234  ;;  %v231_v33 = vpop.xlane.xlu1 %230 }
  0xab   : > { %v268_v34 = vmul.f32 %v1197_v22, %v235_v32  ;;  %v266_v35 = vmul.f32 %v1197_v22, %v231_v33  ;;  %v227_v36 = vpop.xlane.xlu0 %226 }
  0xac   : > { %v264_v37 = vmul.f32 %v1197_v22, %v227_v36 }
  0xad   : > { %v1212_v38 = vsub.f32 %v213_v3, %v268_v34  ;;  %v1214_v39 = vsub.f32 %v211_v4, %v266_v35 }
  0xae   : > { %v1216_v40 = vsub.f32 %v209_v5, %v264_v37 }
  0xaf   : > { %v300_v41 = vmul.f32 %v1212_v38, %v1212_v38  ;;  %v298_v42 = vmul.f32 %v1214_v39, %v1214_v39 }
  0xb0   : > { %v296_v44 = vmul.f32 %v1216_v40, %v1216_v40 }
  0xb1   : > { %321 = vadd.xlane.f32.xlu0 %v300_v41 }
  0xb2   : > { %317 = vadd.xlane.f32.xlu1 %v298_v42  ;;  %313 = vadd.xlane.f32.xlu2 %v296_v44  ;;  %v241_v45 = vpop.xlane.xlu2 %240  ;;  %v239_v46 = vpop.xlane.xlu1 %238 }
  0xb3   : > { %v271_v47 = vmul.f32 %v1197_v22, %v241_v45  ;;  %v237_v48 = vpop.xlane.xlu0 %236  ;;  %v270_v53 = vmul.f32 %v1197_v22, %v239_v46 }
  0xb4   : > { %v269_v50 = vmul.f32 %v1197_v22, %v237_v48 }
  0xb5   : > { %v1230_v51 = vsub.f32 %v216_v6, %v271_v47  ;;  %v1242_v58 = vsub.f32 %v1165_v7, %v270_v53 }
  0xb6   : > { %v1232_v52 = vsub.f32 %v214_v8, %v269_v50 }
  0xb7   : > { %v303_v54 = vmul.f32 %v1230_v51, %v1230_v51  ;;  %v302_v1 = vmul.f32 %v1242_v58, %v1242_v58 }
  0xb8   : > { %v301_v56 = vmul.f32 %v1232_v52, %v1232_v52 }
  0xb9   : > { %327 = vadd.xlane.f32.xlu0 %v303_v54 }
  0xba   : > { %319 = vadd.xlane.f32.xlu2 %v299_v55  ;;  %323 = vadd.xlane.f32.xlu1 %v301_v56  ;;  %v247_v57 = vpop.xlane.xlu2 %246  ;;  %v245_v59 = vpop.xlane.xlu1 %244 }
  0xbb   : > { %v274_v60 = vmul.f32 %v1197_v22, %v247_v57  ;;  %v243_v61 = vpop.xlane.xlu0 %242  ;;  %v273_v2 = vmul.f32 %v1197_v22, %v245_v59 }
  0xbc   : > { %v272_v62 = vmul.f32 %v1197_v22, %v243_v61 }
  0xbd   : > { %v1247_v63 = vsub.f32 %v1170_v9, %v274_v60  ;;  %v1260_v6 = vsub.f32 %v1173_v10, %v273_v2 }
  0xbe   : > { %v1250_v0 = vsub.f32 %v1176_v11, %v272_v62 }
  0xbf   : > { %v306_v3 = vmul.f32 %v1247_v63, %v1247_v63  ;;  %v305_v18 = vmul.f32 %v1260_v6, %v1260_v6 }
  0xc0   : > { %v304_v4 = vmul.f32 %v1250_v0, %v1250_v0 }
  0xc1   : > { %333 = vadd.xlane.f32.xlu0 %v306_v3 }
  0xc2   : > { %325 = vadd.xlane.f32.xlu2 %v302_v1  ;;  %329 = vadd.xlane.f32.xlu1 %v304_v4  ;;  %v253_v5 = vpop.xlane.xlu2 %252  ;;  %v251_v9 = vpop.xlane.xlu1 %250 }
  0xc3   : > { %v277_v7 = vmul.f32 %v1197_v22, %v253_v5  ;;  %v249_v8 = vpop.xlane.xlu0 %248  ;;  %v276_v19 = vmul.f32 %v1197_v22, %v251_v9 }
  0xc4   : > { %v275_v11 = vmul.f32 %v1197_v22, %v249_v8 }
  0xc5   : > { %v1265_v16 = vsub.f32 %v1182_v12, %v277_v7  ;;  %v1278_v12 = vsub.f32 %v1185_v13, %v276_v19 }
  0xc6   : > { %v1268_v17 = vsub.f32 %v1188_v14, %v275_v11 }
  0xc7   : > { %v309_v10 = vmul.f32 %v1265_v16, %v1265_v16  ;;  %v308_v24 = vmul.f32 %v1278_v12, %v1278_v12 }
  0xc8   : > { %v307_v20 = vmul.f32 %v1268_v17, %v1268_v17 }
  0xc9   : > { %339 = vadd.xlane.f32.xlu0 %v309_v10 }
  0xca   : > { %331 = vadd.xlane.f32.xlu2 %v305_v18  ;;  %335 = vadd.xlane.f32.xlu1 %v307_v20 }
  0xcb   : > { %v255_v21 = vpop.xlane.xlu0 %254 }
  0xcc   : > { %v278_v14 = vmul.f32 %v1197_v22, %v255_v21 }
  0xce   : > { %v1282_v23 = vsub.f32 %v1194_v15, %v278_v14 }
  0xd0   : > { %v310_v25 = vmul.f32 %v1282_v23, %v1282_v23 }
  0xd2   : > { %337 = vadd.xlane.f32.xlu2 %v308_v24  ;;  %341 = vadd.xlane.f32.xlu1 %v310_v25 }
 0x11c   : > { %v316_v26 = vpop.xlane.xlu0 %315 }
 0x11d   : > { %v312_v27 = vpop.xlane.xlu1 %311  ;;  %v345_v30 = vmul.f32 %v316_v26, %v1197_v22 }
 0x11e   : > { %v343_v13 = vmul.f32 %v312_v27, %v1197_v22 }
 0x11f   : > { %v361_v31 = vadd.f32 1e-12, %v345_v30  ;;  %v1331_v30 = vld [vmem:[#allocation5] ss:$0 sm:$0xff] }
 0x120   : > { %v359_v32 = vadd.f32 1e-12, %v343_v13 }
 0x121   : > { %853 = vrsqrt.f32 %v361_v31  ;;  %vm401_vm3 = vweird.f32 %v361_v31 }
 0x122   : > { %855 = vrsqrt.f32 %v359_v32  ;;  %vm381_vm4 = vweird.f32 %v359_v32 }
 0x124   : > { %v322_v15 = vpop.xlane.xlu0 %321 }
 0x125   : > { %v318_v33 = vpop.xlane.xlu1 %317  ;;  %v314_v34 = vpop.xlane.xlu2 %313  ;;  %v348_v35 = vmul.f32 %v322_v15, %v1197_v22 }
 0x126   : > { %v346_v36 = vmul.f32 %v318_v33, %v1197_v22  ;;  %v344_v37 = vmul.f32 %v314_v34, %v1197_v22 }
 0x127   : > { %v854_v41 = vpop.eup %853  ;;  %v1293_v42 = vadd.f32 1e-12, %v348_v35 }
 0x128   : > { %v856_v43 = vpop.eup %855  ;;  %v396_v44 = vmul.f32 %v854_v41, %v361_v31  ;;  %v1295_v45 = vadd.f32 1e-12, %v346_v36  ;;  %v1297_v46 = vadd.f32 1e-12, %v344_v37  ;;  %vm402_vm1 = vweird.f32 %v854_v41 }
 0x129   : > { %v376_v47 = vmul.f32 %v856_v43, %v359_v32  ;;  %857 = vrsqrt.f32 %v1293_v42  ;;  %vm382_vm2 = vweird.f32 %v856_v43  ;;  %vm1314_vm5 = vmor %vm401_vm3, %vm402_vm1  ;;  %vm431_vm7 = vweird.f32 %v1293_v42 }
 0x12a   : > { %v397_v48 = vmul.f32 %v854_v41, %v396_v44  ;;  %859 = vrsqrt.f32 %v1295_v45  ;;  %vm383_vm6 = vmor %vm381_vm4, %vm382_vm2  ;;  %vm411_vm9 = vweird.f32 %v1295_v45  ;;  %vm391_vm11 = vweird.f32 %v1297_v46  ;;  %v1348_v44 = vld [vmem:[%s1583_s2] ss:$0 sm:$0xff] }
 0x12b   : > { %v377_v50 = vmul.f32 %v856_v43, %v376_v47  ;;  %861 = vrsqrt.f32 %v1297_v46 }
 0x12c   : > { %v398_v53 = vmul.f32 0.5, %v397_v48  ;;  %v328_v54 = vpop.xlane.xlu0 %327 }
 0x12d   : > { %v378_v55 = vmul.f32 0.5, %v377_v50  ;;  %v320_v56 = vpop.xlane.xlu2 %319  ;;  %v324_v57 = vpop.xlane.xlu1 %323  ;;  %v351_v62 = vmul.f32 %v328_v54, %v1197_v22 }
 0x12e   : > { %v399_v59 = vsub.f32 1.5, %v398_v53  ;;  %v347_v60 = vmul.f32 %v320_v56, %v1197_v22  ;;  %v349_v61 = vmul.f32 %v324_v57, %v1197_v22 }
 0x12f   : > { %v1305_v1 = vpop.eup %857  ;;  %v379_v2 = vsub.f32 1.5, %v378_v55  ;;  %v1326_v14 = vadd.f32 1e-12, %v351_v62 }
 0x130   : > { %v860_v3 = vpop.eup %859  ;;  %v400_v4 = vmul.f32 %v854_v41, %v399_v59  ;;  %v426_v5 = vmul.f32 %v1305_v1, %v1293_v42  ;;  %v1309_v7 = vadd.f32 1e-12, %v347_v60  ;;  %v1319_v19 = vadd.f32 1e-12, %v349_v61 }
 0x131   : > { %v1311_v8 = vpop.eup %861  ;;  %v380_v9 = vmul.f32 %v856_v43, %v379_v2  ;;  %v406_v18 = vmul.f32 %v860_v3, %v1295_v45  ;;  %vm432_vm8 = vweird.f32 %v1305_v1  ;;  %vm412_vm10 = vweird.f32 %v860_v3 }
 0x132   : > { %v404_v10 = vsel %vm1314_vm5, %v854_v41, %v400_v4  ;;  %v386_v20 = vmul.f32 %v1311_v8, %v1297_v46  ;;  %v427_v21 = vmul.f32 %v1305_v1, %v426_v5  ;;  %863 = vrsqrt.f32 %v1309_v7  ;;  %vm1356_vm13 = vmor %vm431_vm7, %vm432_vm8 }
 0x133   : > { %v384_v24 = vsel %vm383_vm6, %v856_v43, %v380_v9  ;;  %v407_v25 = vmul.f32 %v860_v3, %v406_v18  ;;  %v537_v31 = vmul.f32 %v404_v10, %v1201_v28  ;;  %865 = vrsqrt.f32 %v1319_v19  ;;  %vm413_vm14 = vmor %vm411_vm9, %vm412_vm10 }
 0x134   : > { %v387_v26 = vmul.f32 %v1311_v8, %v386_v20  ;;  %v428_v27 = vmul.f32 0.5, %v427_v21  ;;  %v535_v13 = vmul.f32 %v384_v24, %v1203_v29  ;;  %867 = vrsqrt.f32 %v1326_v14  ;;  %v334_v41 = vpop.xlane.xlu0 %333 }
 0x135   : > { %v408_v32 = vmul.f32 0.5, %v407_v25  ;;  %v326_v15 = vpop.xlane.xlu2 %325  ;;  %v330_v37 = vpop.xlane.xlu1 %329  ;;  %vm392_vm12 = vweird.f32 %v1311_v8  ;;  %v557_v48 = vmul.f32 %v1331_v30, %v537_v31  ;;  %vm421_vm15 = vweird.f32 %v1309_v7 }
 0x136   : > { %v388_v33 = vmul.f32 0.5, %v387_v26  ;;  %v429_v34 = vsub.f32 1.5, %v428_v27  ;;  %v350_v36 = vmul.f32 %v326_v15, %v1197_v22  ;;  %v555_v47 = vmul.f32 %v1331_v30, %v535_v13  ;;  %vm393_vm0 = vmor %vm391_vm11, %vm392_vm12 }
 0x137   : > { %v409_v35 = vsub.f32 1.5, %v408_v32  ;;  %v352_v57 = vmul.f32 %v330_v37, %v1197_v22  ;;  %v354_v60 = vmul.f32 %v334_v41, %v1197_v22  ;;  %v577_v5 = vadd.f32 %v1348_v44, %v557_v48 }
 0x138   : > { %v389_v29 = vsub.f32 1.5, %v388_v33  ;;  %v430_v28 = vmul.f32 %v1305_v1, %v429_v34  ;;  %v1343_v43 = vpop.eup %863  ;;  %v1360_v54 = vadd.f32 1e-12, %v350_v36  ;;  %v575_v4 = vadd.f32 %v1348_v44, %v555_v47 }
 0x139   : > { %v410_v50 = vmul.f32 %v860_v3, %v409_v35  ;;  %v416_v56 = vmul.f32 %v1343_v43, %v1309_v7  ;;  %v1370_v42 = vpop.eup %865  ;;  %vm422_vm1 = vweird.f32 %v1343_v43  ;;  %v1400_v24 = vadd.f32 1e-12, %v352_v57 }
 0x13a   : > { %v390_v55 = vmul.f32 %v1311_v8, %v389_v29  ;;  %v434_v45 = vsel %vm1356_vm13, %v1305_v1, %v430_v28  ;;  %869 = vrsqrt.f32 %v1360_v54  ;;  %v1381_v61 = vpop.eup %867  ;;  %v436_v46 = vmul.f32 %v1370_v42, %v1319_v19  ;;  %vm423_vm3 = vmor %vm421_vm15, %vm422_vm1 }
 0x13b   : > { %v414_v59 = vsel %vm413_vm14, %v860_v3, %v410_v50  ;;  %v417_v3 = vmul.f32 %v1343_v43, %v416_v56  ;;  %v456_v9 = vmul.f32 %v1381_v61, %v1326_v14  ;;  %v540_v20 = vmul.f32 %v434_v45, %v1212_v38 }
 0x13c   : > { %v538_v62 = vmul.f32 %v414_v59, %v1214_v39  ;;  %v394_v2 = vsel %vm393_vm0, %v1311_v8, %v390_v55  ;;  %v437_v8 = vmul.f32 %v1370_v42, %v436_v46  ;;  %v1403_v27 = vadd.f32 1e-12, %v354_v60 }
 0x13d   : > { %v536_v1 = vmul.f32 %v394_v2, %v1216_v40  ;;  %v332_v11 = vpop.xlane.xlu2 %331  ;;  %v418_v18 = vmul.f32 0.5, %v417_v3  ;;  %v457_v21 = vmul.f32 %v1381_v61, %v456_v9  ;;  %vm442_vm2 = vweird.f32 %v1370_v42  ;;  %v336_v38 = vpop.xlane.xlu1 %335 }
 0x13e   : > { %v558_v39 = vmul.f32 %v1331_v30, %v538_v62  ;;  %v438_v26 = vmul.f32 0.5, %v437_v8  ;;  %871 = vrsqrt.f32 %v1400_v24  ;;  %vm441_vm4 = vweird.f32 %v1319_v19 }
 0x13f   : > { %v556_v10 = vmul.f32 %v1331_v30, %v536_v1  ;;  %v419_v25 = vsub.f32 1.5, %v418_v18  ;;  %v458_v32 = vmul.f32 0.5, %v457_v21  ;;  %873 = vrsqrt.f32 %v1403_v27  ;;  %vm1430_vm5 = vmor %vm441_vm4, %vm442_vm2 }
 0x140   : > { %v578_v40 = vadd.f32 %v1348_v44, %v558_v39  ;;  %v1405_v13 = vpop.eup %869  ;;  %v439_v34 = vsub.f32 1.5, %v438_v26  ;;  %v560_v29 = vmul.f32 %v1331_v30, %v540_v20  ;;  %vm461_vm6 = vweird.f32 %v1326_v14 }
 0x141   : > { %v576_v31 = vadd.f32 %v1348_v44, %v556_v10  ;;  %v420_v33 = vmul.f32 %v1343_v43, %v419_v25  ;;  %v446_v35 = vmul.f32 %v1405_v13, %v1360_v54  ;;  %v459_v37 = vsub.f32 1.5, %v458_v32 }
 0x142   : > { %v748_v15 = vpack.c.bf16 %v578_v40, %v577_v5  ;;  %v440_v41 = vmul.f32 %v1370_v42, %v439_v34  ;;  %v353_v48 = vmul.f32 %v332_v11, %v1197_v22  ;;  %vm462_vm7 = vweird.f32 %v1381_v61 }
 0x143   : > { %v743_v36 = vpack.c.bf16 %v576_v31, %v575_v4  ;;  %v424_v28 = vsel %vm423_vm3, %v1343_v43, %v420_v33  ;;  %v447_v47 = vmul.f32 %v1405_v13, %v446_v35  ;;  %vm451_vm8 = vweird.f32 %v1360_v54  ;;  %vm1459_vm10 = vmor %vm461_vm6, %vm462_vm7 }
 0x144   : > { %780 = vst [vmem:[%s1419_s17 + $0x8] sm:$0xff] %v748_v15   ;;  %v539_v7 = vmul.f32 %v424_v28, %v1227_v49  ;;  %v444_v43 = vsel %vm1430_vm5, %v1370_v42, %v440_v41  ;;  %v340_v49 = vpop.xlane.xlu0 %339  ;;  %v872_v53 = vpop.eup %871  ;;  %v460_v56 = vmul.f32 %v1381_v61, %v459_v37  ;;  %v1443_v57 = vadd.f32 1e-12, %v353_v48 }
 0x145   : > { %744 = vst [vmem:[%s1419_s17] sm:$0xff] %v743_v36   ;;  %v448_v50 = vmul.f32 0.5, %v447_v47  ;;  %v355_v59 = vmul.f32 %v336_v38, %v1197_v22  ;;  %v338_v45 = vpop.xlane.xlu2 %337  ;;  %v580_v60 = vadd.f32 %v1348_v44, %v560_v29  ;;  %vm452_vm9 = vweird.f32 %v1405_v13  ;;  %v1449_v2 = vpop.eup %873 }
 0x146   : > { %v559_v55 = vmul.f32 %v1331_v30, %v539_v7  ;;  %v466_v42 = vmul.f32 %v872_v53, %v1400_v24  ;;  %v541_v46 = vmul.f32 %v444_v43, %v1232_v52  ;;  %875 = vrsqrt.f32 %v1443_v57  ;;  %vm453_vm11 = vmor %vm451_vm8, %vm452_vm9  ;;  %v342_v8 = vpop.xlane.xlu1 %341 }
 0x147   : > { %v449_v62 = vsub.f32 1.5, %v448_v50  ;;  %v357_v4 = vmul.f32 %v340_v49, %v1197_v22  ;;  %v486_v11 = vmul.f32 %v1449_v2, %v1403_v27  ;;  %v356_v52 = vmul.f32 %v338_v45, %v1197_v22 }
 0x148   : > { %v579_v3 = vadd.f32 %v1348_v44, %v559_v55  ;;  %v467_v9 = vmul.f32 %v872_v53, %v466_v42  ;;  %v464_v18 = vsel %vm1459_vm10, %v1381_v61, %v460_v56  ;;  %vm471_vm12 = vweird.f32 %v1400_v24 }
 0x149   : > { %v450_v1 = vmul.f32 %v1405_v13, %v449_v62  ;;  %v1473_v14 = vadd.f32 1e-12, %v355_v59  ;;  %vm472_vm13 = vweird.f32 %v872_v53  ;;  %v487_v21 = vmul.f32 %v1449_v2, %v486_v11 }
 0x14a   : > { %v753_v39 = vpack.c.bf16 %v580_v60, %v579_v3  ;;  %v468_v20 = vmul.f32 0.5, %v467_v9  ;;  %v561_v40 = vmul.f32 %v1331_v30, %v541_v46  ;;  %v1481_v54 = vadd.f32 1e-12, %v357_v4  ;;  %vm473_vm0 = vmor %vm471_vm12, %vm472_vm13 }
 0x14b   : > { %v454_v10 = vsel %vm453_vm11, %v1405_v13, %v450_v1  ;;  %877 = vrsqrt.f32 %v1473_v14  ;;  %v488_v26 = vmul.f32 0.5, %v487_v21  ;;  %v1483_v31 = vadd.f32 1e-12, %v356_v52 }
 0x14c   : > { %781 = vst [vmem:[%s1419_s17 + $0x10] sm:$0xff] %v753_v39   ;;  %v542_v25 = vmul.f32 %v454_v10, %v1242_v58  ;;  %v469_v61 = vsub.f32 1.5, %v468_v20  ;;  %v358_v32 = vmul.f32 %v342_v8, %v1197_v22  ;;  %v876_v13 = vpop.eup %875  ;;  %v543_v38 = vmul.f32 %v464_v18, %v1230_v51 }
 0x14d   : > { %vm491_vm14 = vweird.f32 %v1403_v27  ;;  %879 = vrsqrt.f32 %v1481_v54  ;;  %v489_v33 = vsub.f32 1.5, %v488_v26  ;;  %vm492_vm15 = vweird.f32 %v1449_v2 }
 0x14e   : > { %v562_v15 = vmul.f32 %v1331_v30, %v542_v25  ;;  %v470_v58 = vmul.f32 %v872_v53, %v469_v61  ;;  %v476_v34 = vmul.f32 %v876_v13, %v1443_v57  ;;  %v581_v35 = vadd.f32 %v1348_v44, %v561_v40  ;;  %vm493_vm1 = vmor %vm491_vm14, %vm492_vm15 }
 0x14f   : > { %881 = vrsqrt.f32 %v1483_v31  ;;  %v1498_v22 = vadd.f32 1e-12, %v358_v32  ;;  %v490_v37 = vmul.f32 %v1449_v2, %v489_v33  ;;  %v563_v41 = vmul.f32 %v1331_v30, %v543_v38 }
 0x150   : > { %v582_v36 = vadd.f32 %v1348_v44, %v562_v15  ;;  %v474_v51 = vsel %vm473_vm0, %v872_v53, %v470_v58  ;;  %v477_v29 = vmul.f32 %v876_v13, %v476_v34  ;;  %vm482_vm2 = vweird.f32 %v876_v13 }
 0x151   : > { %v878_v28 = vpop.eup %877  ;;  %v544_v7 = vmul.f32 %v474_v51, %v1250_v0  ;;  %883 = vrsqrt.f32 %v1498_v22  ;;  %v494_v24 = vsel %vm493_vm1, %v1449_v2, %v490_v37  ;;  %v583_v27 = vadd.f32 %v1348_v44, %v563_v41 }
 0x152   : > { %v758_v47 = vpack.c.bf16 %v582_v36, %v581_v35  ;;  %v478_v19 = vmul.f32 0.5, %v477_v29  ;;  %v496_v48 = vmul.f32 %v878_v28, %v1473_v14  ;;  %v546_v59 = vmul.f32 %v494_v24, %v1247_v63 }
 0x153   : > { %v880_v43 = vpop.eup %879  ;;  %v564_v50 = vmul.f32 %v1331_v30, %v544_v7  ;;  %vm481_vm3 = vweird.f32 %v1443_v57  ;;  %vm501_vm5 = vweird.f32 %v1473_v14  ;;  %vm502_vm6 = vweird.f32 %v878_v28 }
 0x154   : > { %782 = vst [vmem:[%s1419_s17 + $0x18] sm:$0xff] %v758_v47   ;;  %v479_v49 = vsub.f32 1.5, %v478_v19  ;;  %v497_v53 = vmul.f32 %v878_v28, %v496_v48  ;;  %v516_v55 = vmul.f32 %v880_v43, %v1481_v54  ;;  %vm483_vm4 = vmor %vm481_vm3, %vm482_vm2  ;;  %v566_v63 = vmul.f32 %v1331_v30, %v546_v59 }
 0x155   : > { %v882_v0 = vpop.eup %881  ;;  %v584_v56 = vadd.f32 %v1348_v44, %v564_v50  ;;  %vm521_vm7 = vweird.f32 %v1481_v54  ;;  %vm522_vm8 = vweird.f32 %v880_v43  ;;  %vm503_vm9 = vmor %vm501_vm5, %vm502_vm6  ;;  %vm511_vm12 = vweird.f32 %v1483_v31 }
 0x156   : > { %v480_v45 = vmul.f32 %v876_v13, %v479_v49  ;;  %v498_v60 = vmul.f32 0.5, %v497_v53  ;;  %v517_v62 = vmul.f32 %v880_v43, %v516_v55  ;;  %v506_v42 = vmul.f32 %v882_v0, %v1483_v31  ;;  %vm523_vm11 = vmor %vm521_vm7, %vm522_vm8 }
 0x157   : > { %v884_v2 = vpop.eup %883  ;;  %v763_v3 = vpack.c.bf16 %v584_v56, %v583_v27  ;;  %vm512_vm10 = vweird.f32 %v882_v0  ;;  %vm531_vm15 = vweird.f32 %v1498_v22 }
 0x158   : > { %v484_v46 = vsel %vm483_vm4, %v876_v13, %v480_v45  ;;  %v499_v4 = vsub.f32 1.5, %v498_v60  ;;  %v518_v5 = vmul.f32 0.5, %v517_v62  ;;  %v507_v1 = vmul.f32 %v882_v0, %v506_v42  ;;  %vm513_vm13 = vmor %vm511_vm12, %vm512_vm10 }
 0x159   : > { %783 = vst [vmem:[%s1419_s17 + $0x20] sm:$0xff] %v763_v3   ;;  %v545_v57 = vmul.f32 %v484_v46, %v1260_v6  ;;  %v526_v9 = vmul.f32 %v884_v2, %v1498_v22  ;;  %v586_v6 = vadd.f32 %v1348_v44, %v566_v63  ;;  %vm532_vm14 = vweird.f32 %v884_v2 }
 0x15a   : > { %v500_v11 = vmul.f32 %v878_v28, %v499_v4  ;;  %v519_v52 = vsub.f32 1.5, %v518_v5  ;;  %v508_v39 = vmul.f32 0.5, %v507_v1  ;;  %vm533_vm0 = vmor %vm531_vm15, %vm532_vm14 }
 0x15b   : > { %v565_v18 = vmul.f32 %v1331_v30, %v545_v57  ;;  %v527_v8 = vmul.f32 %v884_v2, %v526_v9 }
 0x15c   : > { %v504_v10 = vsel %vm503_vm9, %v878_v28, %v500_v11  ;;  %v520_v20 = vmul.f32 %v880_v43, %v519_v52  ;;  %v509_v21 = vsub.f32 1.5, %v508_v39 }
 0x15d   : > { %v585_v40 = vadd.f32 %v1348_v44, %v565_v18  ;;  %v547_v25 = vmul.f32 %v504_v10, %v1268_v17  ;;  %v528_v61 = vmul.f32 0.5, %v527_v8 }
 0x15e   : > { %v524_v26 = vsel %vm523_vm11, %v880_v43, %v520_v20  ;;  %v510_v14 = vmul.f32 %v882_v0, %v509_v21 }
 0x15f   : > { %v768_v32 = vpack.c.bf16 %v586_v6, %v585_v40  ;;  %v529_v13 = vsub.f32 1.5, %v528_v61  ;;  %v549_v38 = vmul.f32 %v524_v26, %v1265_v16  ;;  %v567_v17 = vmul.f32 %v1331_v30, %v547_v25 }
 0x160   : > { %v514_v15 = vsel %vm513_vm13, %v882_v0, %v510_v14 }
 0x161   : > { %784 = vst [vmem:[%s1419_s17 + $0x28] sm:$0xff] %v768_v32   ;;  %v548_v54 = vmul.f32 %v514_v15, %v1278_v12  ;;  %v530_v58 = vmul.f32 %v884_v2, %v529_v13  ;;  %v569_v16 = vmul.f32 %v1331_v30, %v549_v38  ;;  %v587_v12 = vadd.f32 %v1348_v44, %v567_v17 }
 0x163   : > { %v568_v31 = vmul.f32 %v1331_v30, %v548_v54  ;;  %v534_v33 = vsel %vm533_vm0, %v884_v2, %v530_v58  ;;  %v589_v51 = vadd.f32 %v1348_v44, %v569_v16 }
 0x164   : > { %v550_v34 = vmul.f32 %v534_v33, %v1282_v23 }
 0x165   : > { %v588_v35 = vadd.f32 %v1348_v44, %v568_v31 }
 0x166   : > { %v570_v36 = vmul.f32 %v1331_v30, %v550_v34 }
 0x167   : > { %v773_v22 = vpack.c.bf16 %v588_v35, %v587_v12 }
 0x168   : > { %v590_v37 = vadd.f32 %v1348_v44, %v570_v36 }
 0x169   : > { %785 = vst [vmem:[%s1419_s17 + $0x30] sm:$0xff] %v773_v22  }
 0x16a   : > { %v778_v29 = vpack.c.bf16 %v590_v37, %v589_v51 }
 0x16c   : > { %786 = vst [vmem:[%s1419_s17 + $0x38] sm:$0xff] %v778_v29  }
 0x16d   : > { %972 = shalt.err (!%p969_p8)
}
 0x16e   : > { %s1021_s10 = smov 64   ;;  %s1022_s23 = smov 4  }
 0x16f   : > { %793 = dma.vmem_to_hbm [thread:$0]  (%p1095_p11), %s637_s16, 1024, %s639_s30, %s624_s4, %s1021_s10, %s1021_s10, %s1022_s23  }
 0x170 PF: > { %s653_s26 = sand.u32 1, %s1003_s12   ;;  %p1599_p9 = scmp.ge.s32.totalorder %s1015_s15, 2 }
 0x171   : > { %s654_s6 = scalar_lea.sflag [#allocation4], %s653_s26 }
 0x172   : > { %p804_p10 = pnand %p1599_p9, %p1099_p12 }
 0x174   : > { %p805_p1 = pneg %p804_p10 }
 0x176   : > { %998 = dma.done.wait (%p805_p1), %s654_s6, 1024  }
 0x177   : > { %1000 = vsyncadd (%p805_p1), %s654_s6, 4294966272  ;;  %p17_p2 = scmp.ge.s32.totalorder %s1068_s18, 4   ;;  %s1600_s12 = smov %s1007_s13 }
 0x178   : > { %s1601_s13 = smov %s1011_s14  ;;  %s1602_s14 = smov %s1080_s21 }
 0x179   : > { %s1603_s15 = smov %s1068_s18  ;;  %19 = sbr.rel (!%p17_p2) target bundleno = 6 (0x6), region = 81 }
 0x17e   :  { %660 = vsyncpa [#allocation3], 1 }
 0x17f   :  { %662 = vsyncpa [#allocation3 + $0x1], 1 }
 0x180   :  { %663 = vsyncpa [#allocation6], 1 }
 0x181   :  { %664 = vsyncpa [#allocation4], 1 }
 0x182   :  { %666 = vsyncpa [#allocation4 + $0x1], 1 }

</bundles_post_ra>
